<compile_context>
chip_gen: v6e
topology: v6e:2x2x1
jax: 0.10.0
libtpu: 0.0.40
codegen_flags: <defaults>
</compile_context>

<pallas_src>
import jax
import jax.numpy as jnp
from jax.experimental import pallas as pl
from jax.experimental.pallas import tpu as pltpu

EPS = 1e-5


def _round_up(x, m):
    return ((x + m - 1) // m) * m


# ----------------------------- kernels --------------------------------------

def _prenorm_linear_wres_kernel(x_ref, gamma_ref, beta_ref, w_ref, b_ref, o_ref):
    """Weight-resident path: full (D, D) weight tile, single grid axis over rows."""
    x = x_ref[...].astype(jnp.float32)
    mean = jnp.mean(x, axis=-1, keepdims=True)
    xc = x - mean
    var = jnp.mean(xc * xc, axis=-1, keepdims=True)          # two-pass: no cancellation
    inv = jax.lax.rsqrt(var + EPS)
    y = xc * inv * gamma_ref[...].astype(jnp.float32) + beta_ref[...].astype(jnp.float32)
    out = jnp.dot(y.astype(w_ref.dtype), w_ref[...], preferred_element_type=jnp.float32)
    o_ref[...] = (out + b_ref[...].astype(jnp.float32)).astype(o_ref.dtype)


def _prenorm_linear_tiled_kernel(x_ref, gamma_ref, beta_ref, w_ref, b_ref, o_ref, y_ref):
    """Column-tiled path: LayerNorm cached in y_ref at j == 0, reused across W col tiles."""
    @pl.when(pl.program_id(1) == 0)
    def _():
        x = x_ref[...].astype(jnp.float32)
        mean = jnp.mean(x, axis=-1, keepdims=True)
        xc = x - mean
        var = jnp.mean(xc * xc, axis=-1, keepdims=True)
        inv = jax.lax.rsqrt(var + EPS)
        y = xc * inv * gamma_ref[...].astype(jnp.float32) \
            + beta_ref[...].astype(jnp.float32)
        y_ref[...] = y.astype(y_ref.dtype)

    out = jnp.dot(y_ref[...], w_ref[...], preferred_element_type=jnp.float32)
    o_ref[...] = (out + b_ref[...].astype(jnp.float32)).astype(o_ref.dtype)


# ----------------------------- wrapper ---------------------------------------

def prenorm_linear(x, gamma, beta, weight, bias, *,
                   tile_m=None, tile_n=512, use_bf16_mxu=False,
                   w_resident=None, w_buffers=2, vmem_limit_bytes=None):
    """fn(LayerNorm(x)) with fn = nn.Linear(D, D).

    x:      (B, N, D)
    gamma, beta, bias: (D,)
    weight: (D, D) in PyTorch nn.Linear layout (out_features, in_features).
    """
    B, N, D = x.shape
    M = B * N

    # PyTorch stores Linear weight as (out, in); the kernel consumes (in, out).
    w = jnp.transpose(weight)

    # ---- generation-aware VMEM budget --------------------------------------
    try:
        phys_vmem = getattr(pltpu.get_tpu_info(), "vmem_capacity_bytes", None)
    except Exception:
        phys_vmem = None
    if phys_vmem is None:
        phys_vmem = 64 << 20                     # conservative (v7x-sized) fallback
    if vmem_limit_bytes is None:
        # v7x (64 MiB physical per TC): stay well under the ceiling.
        # v5e/v6e (128 MiB physical): use a larger slice for bigger row tiles.
        vmem_limit_bytes = (52 << 20) if phys_vmem <= (64 << 20) else (96 << 20)
    budget = int(0.85 * vmem_limit_bytes)        # headroom for sems / internal scratch

    # ---- MXU operand dtype (opt-in bf16 feed for f32 inputs) ----------------
    if use_bf16_mxu and x.dtype == jnp.float32:
        mxu_dtype = jnp.bfloat16
    else:
        mxu_dtype = x.dtype
    w = w.astype(mxu_dtype)

    isz_x = jnp.dtype(x.dtype).itemsize
    isz_w = jnp.dtype(mxu_dtype).itemsize
    isz_o = isz_x

    # ---- path selection: keep W resident in VMEM when it fits --------------
    if D % 128 != 0:
        w_resident = True                        # odd D cannot be lane-tiled (small D)
    elif w_resident is None:
        w_resident = (2 * D * D * isz_w) <= budget // 2

    # ---- row tile: dtype-aware granule, megacore balance, VMEM fit ----------
    granule = {4: 8, 2: 16, 1: 32}.get(isz_x, 8)
    if tile_m is None:
        tile_m = 384 if phys_vmem <= (64 << 20) else 768
    tile_m = max(_round_up(tile_m, granule), granule)
    tile_m = min(tile_m, _round_up(M, granule))          # don't over-tile tiny inputs
    if M > granule:                                       # >= 2 "parallel" grid steps
        tile_m = min(tile_m, _round_up((M + 1) // 2, granule))

    # ---- column tile (lane axis) --------------------------------------------
    if w_resident:
        tile_n = D
        n_pad = D
    else:
        # Keep tile_n a multiple of 256 (v6e/v7x 2x256 MXU; lane-dense stores).
        tn = max(256, min(_round_up(tile_n, 256), _round_up(D, 256)))
        if D % 256 == 0:
            tile_n = tn
            while D % tile_n != 0:
                tile_n -= 256
            n_pad = D
        else:                                    # D % 128 == 0 but not 256: pad columns
            tile_n = 256
            n_pad = _round_up(D, 256)

    # ---- dtype-aware VMEM-fit shrink loop ------------------------------------
    def _need(tm):
        ln_tmp = 3 * tm * D * 4                  # f32 LN intermediates (x, x-mean, y)
        small = 8 * D * 4                        # gamma/beta/bias
        if w_resident:
            return (2 * D * D * isz_w            # W, conservatively double-buffered
                    + 2 * tm * D * isz_x         # x tile, double-buffered
                    + 2 * tm * D * isz_o         # out tile, double-buffered
                    + ln_tmp + small)
        nbuf = max(2, w_buffers)
        return (2 * tm * D * isz_x
                + 2 * tm * tile_n * isz_o
                + nbuf * D * tile_n * isz_w      # W column stream
                + tm * D * isz_w                 # y scratch
                + ln_tmp + small)

    while tile_m > granule and _need(tile_m) > budget:
        tile_m = max(granule, _round_up(tile_m // 2, granule))

    # ---- pad rows (and columns for the tiled path) ---------------------------
    m_pad = _round_up(M, tile_m)
    x2 = x.reshape(M, D)
    if m_pad != M:
        x2 = jnp.pad(x2, ((0, m_pad - M), (0, 0)))
    if n_pad != D:
        w = jnp.pad(w, ((0, 0), (0, n_pad - D)))
        bias = jnp.pad(bias, (0, n_pad - D))

    gamma2 = gamma.reshape(1, D)
    beta2 = beta.reshape(1, D)
    b2 = bias.reshape(1, n_pad)

    if w_resident:
        grid = (m_pad // tile_m,)
        out = pl.pallas_call(
            _prenorm_linear_wres_kernel,
            out_shape=jax.ShapeDtypeStruct((m_pad, D), x.dtype),
            grid_spec=pltpu.PrefetchScalarGridSpec(
                num_scalar_prefetch=0,
                grid=grid,
                in_specs=[
                    pl.BlockSpec((tile_m, D), lambda i: (i, 0)),   # x row tile
                    pl.BlockSpec((1, D), lambda i: (0, 0)),        # gamma
                    pl.BlockSpec((1, D), lambda i: (0, 0)),        # beta
                    pl.BlockSpec((D, D), lambda i: (0, 0)),        # W (grid-invariant)
                    pl.BlockSpec((1, D), lambda i: (0, 0)),        # bias
                ],
                out_specs=pl.BlockSpec((tile_m, D), lambda i: (i, 0)),
            ),
            compiler_params=pltpu.CompilerParams(
                dimension_semantics=("parallel",),
                vmem_limit_bytes=vmem_limit_bytes),
        )(x2, gamma2, beta2, w, b2)
        return out[:M].reshape(B, N, D)

    # Column-tiled fallback (very large D): LN cached once per row tile.
    # TODO(synk): the LN at j==0 is not overlapped with the previous row tile's matmuls;
    # a 2-slot y scratch could hide that bubble if it shows up in profiles.
    w_spec_kwargs = {}
    if w_buffers > 2:
        w_spec_kwargs["pipeline_mode"] = pl.Buffered(w_buffers)
    grid = (m_pad // tile_m, n_pad // tile_n)
    out = pl.pallas_call(
        _prenorm_linear_tiled_kernel,
        out_shape=jax.ShapeDtypeStruct((m_pad, n_pad), x.dtype),
        grid_spec=pltpu.PrefetchScalarGridSpec(
            num_scalar_prefetch=0,
            grid=grid,
            in_specs=[
                pl.BlockSpec((tile_m, D), lambda i, j: (i, 0)),            # x row tile
                pl.BlockSpec((1, D), lambda i, j: (0, 0)),                 # gamma
                pl.BlockSpec((1, D), lambda i, j: (0, 0)),                 # beta
                pl.BlockSpec((D, tile_n), lambda i, j: (0, j),
                             **w_spec_kwargs),                             # W col tile
                pl.BlockSpec((1, tile_n), lambda i, j: (0, j)),            # bias cols
            ],
            out_specs=pl.BlockSpec((tile_m, tile_n), lambda i, j: (i, j)),
            scratch_shapes=[pltpu.VMEM((tile_m, D), mxu_dtype)],           # LN(x) cache
        ),
        compiler_params=pltpu.CompilerParams(
            dimension_semantics=("parallel", "arbitrary"),
            vmem_limit_bytes=vmem_limit_bytes),
    )(x2, gamma2, beta2, w, b2)
    return out[:M, :D].reshape(B, N, D)


# ----------------------------- reference & tests -----------------------------

def _reference(x, gamma, beta, weight, bias):
    x = x.astype(jnp.float32)
    mean = jnp.mean(x, axis=-1, keepdims=True)
    var = jnp.mean((x - mean) ** 2, axis=-1, keepdims=True)
    y = (x - mean) / jnp.sqrt(var + EPS) * gamma + beta
    # weight in torch layout (out, in): y @ weight.T + bias
    return jnp.einsum("bnd,ed->bne", y, weight) + bias


def _check(key, B, N, D, atol=1e-4, rtol=1e-4, dtype=jnp.float32, **kw):
    kx, kw_, kb = jax.random.split(key, 3)
    x = jax.random.normal(kx, (B, N, D), dtype=jnp.float32).astype(dtype)
    gamma = jnp.ones((D,), jnp.float32)                 # PyTorch LayerNorm init
    beta = jnp.zeros((D,), jnp.float32)
    weight = jax.random.normal(kw_, (D, D), jnp.float32) * 0.05   # torch (out, in)
    bias = jax.random.normal(kb, (D,), jnp.float32) * 0.05

    out = jax.block_until_ready(prenorm_linear(x, gamma, beta, weight, bias, **kw))
    ref = _reference(x.astype(jnp.float32), gamma, beta, weight, bias)
    assert out.shape == (B, N, D)
    assert jnp.allclose(out.astype(jnp.float32), ref, atol=atol, rtol=rtol), \
        f"mismatch vs reference (B={B}, N={N}, D={D}, kw={kw})"


if __name__ == "__main__":
    key = jax.random.PRNGKey(0)
    k1, k2, k3, k4, k5 = jax.random.split(key, 5)

    # Small canonical shape (D not a multiple of 128 -> weight-resident path).
    _check(k1, B=2, N=8, D=32)

    # Non-multiple-of-8 row count -> exercises the zero-pad + slice path.
    _check(k2, B=2, N=7, D=32)

    # Forced column-tiled path (tile_n multiple of 256, LN cached across j).
    _check(k3, B=2, N=8, D=512, w_resident=False, tile_n=256)

    # D multiple of 128 but not 256 -> column-padded tiled path (N padded to 512).
    _check(k4, B=2, N=8, D=384, w_resident=False)

    # Opt-in bf16 MXU feed on f32 inputs (f32 LN stats / accumulation, looser tol).
    _check(k5, B=2, N=8, D=256, use_bf16_mxu=True, atol=5e-2, rtol=5e-2)

    # TODO(synk): `fn` is an arbitrary callable in the PyTorch module; only the
    # canonical fn = nn.Linear(dim, dim) case is fused here.
    print("KERNEL_OK")
</pallas_src>

<mosaic_0001>
module attributes {stable_mosaic.version = 11 : i64} {
  func.func @_prenorm_linear_wres_kernel(%arg0: i32, %arg1: memref<8x32xf32, #tpu.memory_space<vmem>>, %arg2: memref<1x32xf32, #tpu.memory_space<vmem>>, %arg3: memref<1x32xf32, #tpu.memory_space<vmem>>, %arg4: memref<32x32xf32, #tpu.memory_space<vmem>>, %arg5: memref<1x32xf32, #tpu.memory_space<vmem>>, %arg6: memref<8x32xf32, #tpu.memory_space<vmem>>) attributes {dimension_semantics = [#tpu.dimension_semantics<parallel>], iteration_bounds = array<i64: 2>, scalar_prefetch = 0 : i64, scratch_operands = 0 : i64, tpu.core_type = #tpu.core_type<tc>, window_params = [{transform_indices = @transform_0, window_bounds = array<i64: 8, 32>}, {pipeline_mode = #tpu.pipeline_mode<synchronous>, transform_indices = @transform_1, window_bounds = array<i64: 1, 32>}, {pipeline_mode = #tpu.pipeline_mode<synchronous>, transform_indices = @transform_2, window_bounds = array<i64: 1, 32>}, {pipeline_mode = #tpu.pipeline_mode<synchronous>, transform_indices = @transform_3, window_bounds = array<i64: 32, 32>}, {pipeline_mode = #tpu.pipeline_mode<synchronous>, transform_indices = @transform_4, window_bounds = array<i64: 1, 32>}, {transform_indices = @transform_5, window_bounds = array<i64: 8, 32>}]} {
    %c0 = arith.constant 0 : index
    %c0_0 = arith.constant 0 : index
    %0 = vector.load %arg1[%c0, %c0_0] : memref<8x32xf32, #tpu.memory_space<vmem>>, vector<8x32xf32>
    %cst = arith.constant dense<0.000000e+00> : vector<8xf32>
    %1 = vector.multi_reduction <add>, %0, %cst [1] : vector<8x32xf32> to vector<8xf32>
    %2 = vector.shape_cast %1 : vector<8xf32> to vector<8x1xf32>
    %cst_1 = arith.constant 3.200000e+01 : f32
    %3 = vector.broadcast %cst_1 : f32 to vector<8x1xf32>
    %4 = arith.divf %2, %3 : vector<8x1xf32>
    %5 = vector.broadcast %4 : vector<8x1xf32> to vector<8x32xf32>
    %6 = arith.subf %0, %5 : vector<8x32xf32>
    %7 = arith.mulf %6, %6 : vector<8x32xf32>
    %cst_2 = arith.constant dense<0.000000e+00> : vector<8xf32>
    %8 = vector.multi_reduction <add>, %7, %cst_2 [1] : vector<8x32xf32> to vector<8xf32>
    %9 = vector.shape_cast %8 : vector<8xf32> to vector<8x1xf32>
    %cst_3 = arith.constant 3.200000e+01 : f32
    %10 = vector.broadcast %cst_3 : f32 to vector<8x1xf32>
    %11 = arith.divf %9, %10 : vector<8x1xf32>
    %cst_4 = arith.constant 9.99999974E-6 : f32
    %12 = vector.broadcast %cst_4 : f32 to vector<8x1xf32>
    %13 = arith.addf %11, %12 : vector<8x1xf32>
    %14 = math.rsqrt %13 : vector<8x1xf32>
    %15 = vector.broadcast %14 : vector<8x1xf32> to vector<8x32xf32>
    %16 = arith.mulf %6, %15 : vector<8x32xf32>
    %c0_5 = arith.constant 0 : index
    %c0_6 = arith.constant 0 : index
    %17 = vector.load %arg2[%c0_5, %c0_6] : memref<1x32xf32, #tpu.memory_space<vmem>>, vector<1x32xf32>
    %18 = vector.broadcast %17 : vector<1x32xf32> to vector<8x32xf32>
    %19 = arith.mulf %16, %18 : vector<8x32xf32>
    %c0_7 = arith.constant 0 : index
    %c0_8 = arith.constant 0 : index
    %20 = vector.load %arg3[%c0_7, %c0_8] : memref<1x32xf32, #tpu.memory_space<vmem>>, vector<1x32xf32>
    %21 = vector.broadcast %20 : vector<1x32xf32> to vector<8x32xf32>
    %22 = arith.addf %19, %21 : vector<8x32xf32>
    %c0_9 = arith.constant 0 : index
    %c0_10 = arith.constant 0 : index
    %23 = vector.load %arg4[%c0_9, %c0_10] : memref<32x32xf32, #tpu.memory_space<vmem>>, vector<32x32xf32>
    %cst_11 = arith.constant dense<0.000000e+00> : vector<8x32xf32>
    %24 = tpu.matmul %22, %23, %cst_11 {dimension_numbers = #tpu.dot_dimension_numbers<[1], [0], [0], [1], [0, 0, 1, 1], [], []>} : vector<8x32xf32>, vector<32x32xf32>, vector<8x32xf32> -> vector<8x32xf32>
    %c0_12 = arith.constant 0 : index
    %c0_13 = arith.constant 0 : index
    %25 = vector.load %arg5[%c0_12, %c0_13] : memref<1x32xf32, #tpu.memory_space<vmem>>, vector<1x32xf32>
    %26 = vector.broadcast %25 : vector<1x32xf32> to vector<8x32xf32>
    %27 = arith.addf %24, %26 : vector<8x32xf32>
    %c0_14 = arith.constant 0 : index
    %c0_15 = arith.constant 0 : index
    %28 = vector.load %arg6[%c0_14, %c0_15] : memref<8x32xf32, #tpu.memory_space<vmem>>, vector<8x32xf32>
    tpu.vector_store %arg6[%c0_14, %c0_15], %27 {strides = array<i32>} : memref<8x32xf32, #tpu.memory_space<vmem>>, vector<8x32xf32>,
    return
  }
  func.func @transform_0(%arg0: i32) -> (i32, i32) {
    %c0_i32 = arith.constant 0 : i32
    %c0_i32_0 = arith.constant 0 : i32
    return %arg0, %c0_i32 : i32, i32
  }
  func.func @transform_1(%arg0: i32) -> (i32, i32) {
    %c0_i32 = arith.constant 0 : i32
    %c0_i32_0 = arith.constant 0 : i32
    %c0_i32_1 = arith.constant 0 : i32
    return %c0_i32, %c0_i32_0 : i32, i32
  }
  func.func @transform_2(%arg0: i32) -> (i32, i32) {
    %c0_i32 = arith.constant 0 : i32
    %c0_i32_0 = arith.constant 0 : i32
    %c0_i32_1 = arith.constant 0 : i32
    return %c0_i32, %c0_i32_0 : i32, i32
  }
  func.func @transform_3(%arg0: i32) -> (i32, i32) {
    %c0_i32 = arith.constant 0 : i32
    %c0_i32_0 = arith.constant 0 : i32
    %c0_i32_1 = arith.constant 0 : i32
    return %c0_i32, %c0_i32_0 : i32, i32
  }
  func.func @transform_4(%arg0: i32) -> (i32, i32) {
    %c0_i32 = arith.constant 0 : i32
    %c0_i32_0 = arith.constant 0 : i32
    %c0_i32_1 = arith.constant 0 : i32
    return %c0_i32, %c0_i32_0 : i32, i32
  }
  func.func @transform_5(%arg0: i32) -> (i32, i32) {
    %c0_i32 = arith.constant 0 : i32
    %c0_i32_0 = arith.constant 0 : i32
    return %arg0, %c0_i32 : i32, i32
  }
}

</mosaic_0001>

<bundles_post_ra>
// kernel: tpu_custom_call.1
= control target key start
LH: loop header
LB: loop body
LE: loop exit
PB: predicated region body
PF: predicated region fallthrough
CT: control target
= control target key end

     0   :  { %10 = vsyncpa [#allocation3], 0  ;;  %s901_s0 = inlined_call_operand.hbm [shape: f32[16,32], index: 0, kind: input, shape index: {}]   ;;  %s902_s1 = inlined_call_operand.vmem [shape: f32[1,32], index: 1, kind: input, shape index: {}]   ;;  %s903_s2 = inlined_call_operand.vmem [shape: f32[1,32], index: 2, kind: input, shape index: {}]   ;;  %s904_s3 = inlined_call_operand.hbm [shape: f32[32,32], index: 3, kind: input, shape index: {}]   ;;  %s905_s4 = inlined_call_operand.vmem [shape: f32[1,32], index: 4, kind: input, shape index: {}]   ;;  %s906_s5 = inlined_call_operand.hbm [shape: f32[16,32], index: 5, kind: output, shape index: {}]  }
   0x1   :  { %12 = vsyncpa [#allocation3 + $0x1], 0 }
   0x2   :  { %13 = vsyncpa [#allocation6], 0 }
   0x3   :  { %14 = vsyncpa [#allocation4], 0 }
   0x4   :  { %16 = vsyncpa [#allocation4 + $0x1], 0  ;;  %s724_s18 = smov 0   ;;  %s726_s19 = smov 0  }
   0x5   :  { %s728_s20 = smov 0   ;;  %s730_s21 = smov 0  }
   0x6 LB: > { %s745_s22 = sadd.s32 4294967295, %s685_s21   ;;  %s466_s23 = sadd.s32 4294967294, %s685_s21   ;;  %s685_s21 = sphi %s730_s21, %s928_s21   ;;  %s681_s20 = sphi %s728_s20, %s927_s20   ;;  %s677_s19 = sphi %s726_s19, %s926_s19   ;;  %s673_s18 = sphi %s724_s18, %s925_s18  }
   0x7   : > { %p42_p0 = scmp.ne.s32.totalorder %s677_s19, %s673_s18  ;;  %p907_p1 = scmp.eq.s32.totalorder %s745_s22, 0 }
   0x8   : > { %p156_p3 = scmp.eq.s32.totalorder %s466_s23, 1  ;;  %p467_p5 = scmp.ge.s32.totalorder %s685_s21, 1 }
   0x9   : > { %p754_p4 = por %p907_p1, %p42_p0  ;;  %p163_p7 = scmp.lt.s32.totalorder %s685_s21, 3 }
   0xa   : > { %p759_p6 = por %p156_p3, %p42_p0  ;;  %s687_s27 = smov [#allocation5]  }
   0xb   : > { %s911_s24 = scalar_select %p754_p4, 1, 0 }
   0xc   : > { %s912_s25 = scalar_select %p759_p6, 1, 0 }
   0xd   : > { %p764_p8 = pnand %p467_p5, %p163_p7  ;;  %s181_s28 = sshll.u32 %s687_s27, 4  ;;  %s182_s28 = int_to_ptr.vmem [resolvable:$true] %s181_s28 }
   0xe   : > { %s778_s30 = sadd.s32 1, %s685_s21   ;;  %s29_s6 = sadd.s32 1, %s681_s20 }
   0xf   : > { %s913_s26 = scalar_select %p764_p8, 1, 0 }
  0x10   : > { %p508_p9 = pneg %p764_p8  ;;  %s26_s7 = ssub.s32 %s685_s21, %s778_s30 }
  0x11   : > { %s574_s8 = scalar_lea.vmem %s182_s28, 512  ;;  %p582_p5 = scmp.lt.s32.totalorder %s182_s28, %s182_s28 }
  0x12   : > { %p773_p11 = pnand %p508_p9, %p907_p1  ;;  %p575_p13 = scmp.ne.s32.totalorder %s182_s28, %s574_s8 }
  0x13   : > { %p583_p7 = scmp.lt.s32.totalorder %s574_s8, %s574_s8 }
  0x14   : > { %p565_p12 = pneg %p773_p11 }
  0x15   : > { %p584_p10 = por %p583_p7, %p582_p5 }
  0x16   : > { %p577_p0 = pnand %p575_p13, %p565_p12 }
  0x18   : > { %p578_p3 = pneg %p577_p0 }
  0x1a   : > { %p585_p2 = pnand %p584_p10, %p578_p3 }
  0x1c   : > { %588 = shalt.err (!%p585_p2)
}
  0x1d   : > { %s688_s9 = smov 128   ;;  %s689_s10 = smov 8  }
  0x1e   : > { %511 = dma.hbm_to_vmem [thread:$0]  (!%p773_p11), %s904_s3, 512, %s182_s28, [#allocation6], %s688_s9, %s688_s9, %s689_s10  }
  0x1f   : > { %p27_p9 = scmp.eq.s32.totalorder %s26_s7, 0  ;;  %p36_p12 = scmp.ne.s32.totalorder %s681_s20, %s677_s19 }
  0x20   : > { %p37_p10 = scmp.eq.s32.totalorder %s685_s21, 0  ;;  %p521_p2 = scmp.lt.s32.totalorder %s685_s21, 2 }
  0x21   : > { %s795_s13 = scalar_select %p27_p9, %s681_s20, %s29_s6  }
  0x22   : > { %p38_p13 = por %p37_p10, %p36_p12  ;;  %p915_p0 = scmp.eq.s32.totalorder %s745_s22, 1 }
  0x23   : > { %s198_s15 = sand.u32 1, %s681_s20   ;;  %s471_s16 = sshll.u32 %s685_s21, 7 }
  0x24   : > { %p799_p3 = por %p915_p0, %p36_p12  ;;  %s470_s17 = sshll.u32 %s198_s15, 3 }
  0x25   : > { %s808_s29 = scalar_lea.hbm %s901_s0, %s471_s16  ;;  %s202_s28 = scalar_lea.vmem [#allocation2], %s470_s17 }
  0x26   : > { %s916_s14 = scalar_select %p799_p3, 1, 0 }
  0x27   : > { %s209_s6 = sshll.u32 %s202_s28, 4  ;;  %p810_p11 = pnand %p521_p2, %p38_p13  ;;  %s210_s6 = int_to_ptr.vmem [resolvable:$true] %s209_s6 }
  0x28   : > { %s199_s8 = scalar_lea.sflag [#allocation3], %s198_s15  ;;  %s589_s9 = scalar_lea.hbm %s808_s29, 128 }
  0x29   : > { %p590_p5 = scmp.ne.s32.totalorder %s808_s29, %s589_s9  ;;  %p591_p7 = pneg %p810_p11 }
  0x2a   : > { %s594_s12 = scalar_lea.hbm %s901_s0, 256  ;;  %p595_p10 = scmp.lt.s32.totalorder %s808_s29, %s901_s0 }
  0x2b   : > { %p592_p9 = pnand %p591_p7, %p590_p5  ;;  %p596_p2 = scmp.lt.s32.totalorder %s594_s12, %s589_s9 }
  0x2d   : > { %p593_p12 = pneg %p592_p9  ;;  %p597_p13 = por %p596_p2, %p595_p10 }
  0x2f   : > { %p598_p0 = pnand %p597_p13, %p593_p12 }
  0x31   : > { %601 = shalt.err (!%p598_p0)
}
  0x32   : > { %s602_s23 = scalar_lea.vmem %s210_s6, 128  ;;  %s690_s15 = smov [#allocation2]  }
  0x33   : > { %p603_p1 = scmp.ne.s32.totalorder %s210_s6, %s602_s23  ;;  %s607_s27 = sshll.u32 %s690_s15, 4  ;;  %s608_s27 = int_to_ptr.vmem [resolvable:$false] %s607_s27 }
  0x34   : > { %s609_s28 = scalar_lea.vmem %s608_s27, 256  ;;  %p610_p5 = scmp.lt.s32.totalorder %s210_s6, %s608_s27 }
  0x35   : > { %p605_p6 = pnand %p603_p1, %p591_p7  ;;  %p611_p9 = scmp.lt.s32.totalorder %s609_s28, %s602_s23 }
  0x37   : > { %p606_p3 = pneg %p605_p6  ;;  %p612_p4 = por %p611_p9, %p610_p5 }
  0x39   : > { %p613_p8 = pnand %p612_p4, %p606_p3 }
  0x3b   : > { %616 = shalt.err (!%p613_p8)
}
  0x3c   : > { %515 = dma.hbm_to_vmem [thread:$0]  (!%p810_p11), %s808_s29, 128, %s210_s6, %s199_s8  }
  0x3d   : > { %p918_p12 = scmp.ne.s32.totalorder %s913_s26, 0 }
  0x3e   : > { %s831_s9 = sand.u32 (!%p918_p12), 1, %s677_s19   ;;  %p919_p1 = scmp.ne.s32.totalorder (!%p918_p12), %s911_s24, 0 }
  0x3f   : > { %218 = sbr.rel (%p918_p12) target bundleno = 589 (0x24d), region = 40  ;;  %s473_s10 = sshll.u32 (!%p918_p12), %s831_s9, 3 }
  0x40   : > { %s221_s11 = scalar_lea.sflag (!%p918_p12), [#allocation3], %s831_s9  ;;  %s224_s12 = scalar_lea.vmem (!%p918_p12), [#allocation2], %s473_s10 }
  0x44   : > { %660 = dma.done.wait (%p919_p1), %s221_s11, 128  }
  0x45   : > { %662 = vsyncadd (%p919_p1), %s221_s11, 4294967168  ;;  %p920_p4 = scmp.eq.s32.totalorder %s745_s22, 0 }
  0x47   : > { %664 = dma.done.wait (%p920_p4), [#allocation6], 512   ;;  %p921_p6 = pmov %p920_p4 }
  0x48   : > { %vm256_vm0 = vcmask 261120   ;;  %v255_v0 = vld [vmem:[%s224_s12] sm:$0xff]  ;;  %v691_v8 = vmov 0.0   ;;  %vm692_vm1 = vmmov 0   ;;  %v288_v10 = vld [vmem:[#allocation5 + $0x8] sm:$0xff]  ;;  %v287_v11 = vld [vmem:[#allocation5] sm:$0xff] }
  0x49   : > { %666 = vsyncadd (%p921_p6), [#allocation6], 4294966784  ;;  %v257_v1 = vsel %vm256_vm0, %v255_v0, 0.0  ;;  %v290_v7 = vld [vmem:[#allocation5 + $0x18] sm:$0xff]  ;;  %489 = vmatprep.subr.mxu0 %v691_v8  ;;  %v289_v9 = vld [vmem:[#allocation5 + $0x10] sm:$0xff]  ;;  %497 = vmatprep.mubr.msk.f32.mxu0 %vm692_vm1, %v691_v8  ;;  %s481_s16 = sshll.u32 %s745_s22, 7 }
  0x4a   : > { %258 = vadd.xlane.f32.xlu0 %v257_v1  ;;  %490 = vmatpush3.msra.mxu0 %v290_v7  ;;  %v476_v16 = vld [vmem:[%s902_s1] ss:$0 sm:$0xff]  ;;  %s254_s17 = scalar_lea.vmem [#allocation7], %s473_s10  ;;  %s863_s28 = scalar_lea.hbm %s906_s5, %s481_s16 }
  0x4b   : > { %491 = vmatprep.subr.mxu0 %v691_v8  ;;  %v477_v18 = vld [vmem:[%s903_s2] ss:$0 sm:$0xff]  ;;  %s386_s23 = sshll.u32 %s254_s17, 4  ;;  %s373_s11 = scalar_lea.sflag [#allocation4], %s831_s9  ;;  %s387_s23 = int_to_ptr.vmem [resolvable:$true] %s386_s23 }
  0x4c   : > { %492 = vmatpush3.msra.mxu0 %v289_v9  ;;  %v478_v21 = vld [vmem:[%s905_s4] ss:$0 sm:$0xff]  ;;  %s617_s12 = scalar_lea.vmem %s387_s23, 128  ;;  %p922_p3 = scmp.ne.s32.totalorder %s916_s14, 0 }
  0x4d   : > { %493 = vmatprep.subr.mxu0 %v691_v8  ;;  %p618_p8 = scmp.ne.s32.totalorder %s387_s23, %s617_s12  ;;  %s693_s22 = smov [#allocation7]  }
  0x4e   : > { %494 = vmatpush3.msra.mxu0 %v288_v10  ;;  %s621_s10 = sshll.u32 %s693_s22, 4  ;;  %s622_s10 = int_to_ptr.vmem [resolvable:$false] %s621_s10 }
  0x4f   : > { %495 = vmatprep.subr.mxu0 %v691_v8  ;;  %p619_p11 = pnand %p618_p8, %p922_p3  ;;  %s623_s24 = scalar_lea.vmem %s622_s10, 256 }
  0x50   : > { %496 = vmatpush3.msra.mxu0 %v287_v11  ;;  %p624_p10 = scmp.lt.s32.totalorder %s387_s23, %s622_s10  ;;  %p625_p2 = scmp.lt.s32.totalorder %s623_s24, %s617_s12 }
  0x51   : > { %p620_p7 = pneg %p619_p11 }
  0x52   : > { %p626_p13 = por %p625_p2, %p624_p10 }
  0x54   : > { %p627_p0 = pnand %p626_p13, %p620_p7 }
  0xd3   : > { %v259_v2 = vpop.xlane.xlu0 %258 }
  0xd4   : > { %v261_v3 = vmul.f32 0.03125, %v259_v2 }
  0xd6   : > { %v262_v4 = vsub.f32 %v255_v0, %v261_v3 }
  0xd8   : > { %v263_v5 = vmul.f32 %v262_v4, %v262_v4 }
  0xda   : > { %v264_v6 = vsel %vm256_vm0, %v263_v5, 0.0 }
  0xdb   : > { %265 = vadd.xlane.f32.xlu0 %v264_v6 }
 0x164   : > { %v266_v12 = vpop.xlane.xlu0 %265 }
 0x165   : > { %v267_v13 = vmul.f32 0.03125, %v266_v12 }
 0x167   : > { %v268_v14 = vadd.f32 1e-05, %v267_v13 }
 0x169   : > { %561 = vrsqrt.f32 %v268_v14 }
 0x176   : > { %v562_v15 = vpop.eup %561 }
 0x177   : > { %v270_v17 = vmul.f32 %v562_v15, %v262_v4 }
 0x179   : > { %v278_v19 = vmul.f32 %v476_v16, %v270_v17 }
 0x17b   : > { %v286_v20 = vadd.f32 %v477_v18, %v278_v19 }
 0x17d   : > { %498 = vmatmul.mubr.msk.f32.vlgmr.msra.gmra.mxu0 %vm256_vm0, %v286_v20 }
 0x23d   : > { %v367_v22 = vpop.f32.mrf.mxu0 }
 0x23e   : > { %v368_v23 = vadd.f32 %v478_v21, %v367_v22 }
 0x23f   : > { %v499_v24 = vpop.f32.mrf.mxu0 }
 0x240   : > { %371 = vst.msk [vmem:[%s254_s17] sm:$0xff] %vm256_vm0, %v368_v23 }
 0x241   : > { %630 = shalt.err (!%p627_p0)
}
 0x242   : > { %s631_s26 = scalar_lea.hbm %s863_s28, 128  ;;  %s635_s6 = scalar_lea.hbm %s906_s5, 256 }
 0x243   : > { %p632_p5 = scmp.ne.s32.totalorder %s863_s28, %s631_s26  ;;  %p636_p1 = scmp.lt.s32.totalorder %s863_s28, %s906_s5 }
 0x244   : > { %p637_p4 = scmp.lt.s32.totalorder %s635_s6, %s631_s26 }
 0x245   : > { %p633_p9 = pnand %p632_p5, %p922_p3 }
 0x246   : > { %p638_p6 = por %p637_p4, %p636_p1 }
 0x247   : > { %p634_p12 = pneg %p633_p9 }
 0x249   : > { %p639_p8 = pnand %p638_p6, %p634_p12 }
 0x24b   : > { %642 = shalt.err (!%p639_p8)
}
 0x24c   : > { %506 = dma.vmem_to_hbm [thread:$0]  (%p922_p3), %s387_s23, 128, %s863_s28, %s373_s11  }
 0x24d PF: > { %s398_s16 = sand.u32 1, %s673_s18   ;;  %p923_p11 = scmp.ne.s32.totalorder %s912_s25, 0 }
 0x24e   : > { %p924_p7 = scmp.ge.s32.totalorder %s685_s21, 2  ;;  %s399_s17 = scalar_lea.sflag [#allocation4], %s398_s16 }
 0x250   : > { %p517_p10 = pnand %p924_p7, %p923_p11 }
 0x252   : > { %p518_p2 = pneg %p517_p10 }
 0x254   : > { %668 = dma.done.wait (%p518_p2), %s399_s17, 128  }
 0x255   : > { %670 = vsyncadd (%p518_p2), %s399_s17, 4294967168  ;;  %p19_p13 = scmp.ge.s32.totalorder %s778_s30, 4   ;;  %s925_s18 = smov %s677_s19 }
 0x256   : > { %s926_s19 = smov %s681_s20  ;;  %s927_s20 = smov %s795_s13 }
 0x257   : > { %s928_s21 = smov %s778_s30  ;;  %21 = sbr.rel (!%p19_p13) target bundleno = 6 (0x6), region = 89 }
 0x25c   :  { %404 = vsyncpa [#allocation3], 1 }
 0x25d   :  { %406 = vsyncpa [#allocation3 + $0x1], 1 }
 0x25e   :  { %407 = vsyncpa [#allocation6], 1 }
 0x25f   :  { %408 = vsyncpa [#allocation4], 1 }
 0x260   :  { %410 = vsyncpa [#allocation4 + $0x1], 1 }

</bundles_post_ra>
